<compile_context>
chip_gen: v7x
topology: tpu7x:2x2x1
jax: 0.10.0
libtpu: 0.0.40
codegen_flags: <defaults>
</compile_context>

<pallas_src>
import jax
import jax.numpy as jnp
from jax import lax
from jax.experimental import pallas as pl
from jax.experimental.pallas import tpu as pltpu

EPS = 1e-5
LEAKY_SLOPE = 0.2


def _pass1_kernel(x_ref, w1_ref, b1_ref, w2_ref, y2_ref, s_ref, ss_ref):
    """conv1(1x1,bias) -> LeakyReLU -> conv2(1x1) + per-tile BN moment partials.

    x_ref : (Cin, TP)    pixels on lanes
    w1_ref: (C1, Cin)    b1_ref: (C1, 1)    w2_ref: (C2, C1)
    y2_ref: (C2, TP)     s_ref/ss_ref: (C2, 1) partial sum / sum-of-squares
    """
    h = jnp.dot(w1_ref[...], x_ref[...], preferred_element_type=jnp.float32)
    h = h + b1_ref[...]                                   # lane-broadcast bias
    h = jnp.where(h > 0, h, LEAKY_SLOPE * h)              # LeakyReLU(0.2)
    y2 = jnp.dot(w2_ref[...], h, preferred_element_type=jnp.float32)
    y2_ref[...] = y2
    # single-pass moments for BatchNorm (finalized across tiles in the wrapper)
    s_ref[...] = jnp.sum(y2, axis=1, keepdims=True)
    ss_ref[...] = jnp.sum(y2 * y2, axis=1, keepdims=True)


def _pass2_kernel(y2_ref, scale_ref, shift_ref, w3_ref, out_ref):
    """BN (folded into scale/shift) -> LeakyReLU -> conv3(1x1) -> (1, TP)."""
    y = y2_ref[...] * scale_ref[...] + shift_ref[...]     # fused normalize+affine
    y = jnp.where(y > 0, y, LEAKY_SLOPE * y)              # LeakyReLU(0.2)
    out_ref[...] = jnp.dot(w3_ref[...], y, preferred_element_type=jnp.float32)


def _pick_pixel_tile(hw, cap=1024):
    """Largest multiple of 128 that divides hw (capped); else the full extent."""
    if hw % 128 == 0:
        tp = min(hw, cap)
        while hw % tp:
            tp -= 128
        return tp
    return hw


def pixel_discriminator_forward(x_nchw, w1, b1, w2, w3, gamma, beta):
    """x_nchw: (N, Cin, H, W).  w*: PyTorch (O, I, 1, 1) 1x1-conv weights."""
    N, Cin, H, W = x_nchw.shape
    C1 = w1.shape[0]           # ndf
    C2 = w2.shape[0]           # 2 * ndf
    HW = H * W
    TP = _pick_pixel_tile(HW)
    n_p = HW // TP
    grid = (N, n_p)

    # Boundary glue is free: contiguous NCHW -> (N, C, H*W) is a metadata reshape.
    x = x_nchw.reshape(N, Cin, HW).astype(jnp.float32)
    w1m = w1.reshape(C1, Cin).astype(jnp.float32)
    w2m = w2.reshape(C2, C1).astype(jnp.float32)
    w3m = w3.reshape(1, C2).astype(jnp.float32)
    b1c = b1.reshape(C1, 1).astype(jnp.float32)

    def wspec(shape):  # small resident operand (weights / BN vectors)
        return pl.BlockSpec(shape, lambda n, p: (0, 0))

    cparams = pltpu.CompilerParams(dimension_semantics=("parallel", "parallel"))

    # ---- pass 1: conv1 + LeakyReLU + conv2, emit y2 and BN moment partials ----
    y2, s_part, ss_part = pl.pallas_call(
        _pass1_kernel,
        grid=grid,
        in_specs=[
            pl.BlockSpec((None, Cin, TP), lambda n, p: (n, 0, p)),
            wspec((C1, Cin)),
            wspec((C1, 1)),
            wspec((C2, C1)),
        ],
        out_specs=(
            pl.BlockSpec((None, C2, TP), lambda n, p: (n, 0, p)),
            pl.BlockSpec((None, None, C2, 1), lambda n, p: (n, p, 0, 0)),
            pl.BlockSpec((None, None, C2, 1), lambda n, p: (n, p, 0, 0)),
        ),
        out_shape=(
            jax.ShapeDtypeStruct((N, C2, HW), jnp.float32),
            jax.ShapeDtypeStruct((N, n_p, C2, 1), jnp.float32),
            jax.ShapeDtypeStruct((N, n_p, C2, 1), jnp.float32),
        ),
        compiler_params=cparams,
    )(x, w1m, b1c, w2m)

    # ---- BN finalize (tiny (C2,1) math; training-mode biased batch stats) ----
    count = jnp.float32(N * HW)
    s = jnp.sum(s_part, axis=(0, 1))                    # (C2, 1)
    ss = jnp.sum(ss_part, axis=(0, 1))                  # (C2, 1)
    mean = s / count
    var = ss / count - mean * mean
    inv_std = lax.rsqrt(var + EPS)
    scale = gamma.reshape(C2, 1).astype(jnp.float32) * inv_std
    shift = beta.reshape(C2, 1).astype(jnp.float32) - mean * scale

    # ---- pass 2: normalize + LeakyReLU + conv3 -> (N, 1, HW) lane-dense -------
    out = pl.pallas_call(
        _pass2_kernel,
        grid=grid,
        in_specs=[
            pl.BlockSpec((None, C2, TP), lambda n, p: (n, 0, p)),
            wspec((C2, 1)),
            wspec((C2, 1)),
            wspec((1, C2)),
        ],
        out_specs=pl.BlockSpec((None, 1, TP), lambda n, p: (n, 0, p)),
        out_shape=jax.ShapeDtypeStruct((N, 1, HW), jnp.float32),
        compiler_params=cparams,
    )(y2, scale, shift, w3m)

    return out.reshape(N, 1, H, W)


def _reference(x, w1, b1, w2, w3, gamma, beta):
    """Pure-JAX reference matching PixelDiscriminator.forward (train-mode BN)."""
    dn = lax.conv_dimension_numbers(x.shape, w1.shape, ("NCHW", "OIHW", "NCHW"))

    def conv(v, w):
        return lax.conv_general_dilated(
            v, w, (1, 1), "VALID", dimension_numbers=dn,
            precision=lax.Precision.HIGHEST)

    h = conv(x, w1) + b1.reshape(1, -1, 1, 1)
    h = jnp.where(h > 0, h, LEAKY_SLOPE * h)
    y = conv(h, w2)
    mean = jnp.mean(y, axis=(0, 2, 3), keepdims=True)
    var = jnp.mean((y - mean) ** 2, axis=(0, 2, 3), keepdims=True)
    y = (y - mean) * lax.rsqrt(var + EPS)
    y = y * gamma.reshape(1, -1, 1, 1) + beta.reshape(1, -1, 1, 1)
    y = jnp.where(y > 0, y, LEAKY_SLOPE * y)
    return conv(y, w3)


if __name__ == "__main__":
    N, Cin, H, W = 2, 4, 16, 16
    ndf = 64                                  # module default -> channels 64 / 128 / 1

    key = jax.random.PRNGKey(0)
    kx, k1, k2, k3, k4, k5, k6 = jax.random.split(key, 7)
    x = jax.random.normal(kx, (N, Cin, H, W), jnp.float32)
    w1 = jax.random.normal(k1, (ndf, Cin, 1, 1), jnp.float32) * 0.5
    b1 = jax.random.normal(k2, (ndf,), jnp.float32) * 0.1
    w2 = jax.random.normal(k3, (2 * ndf, ndf, 1, 1), jnp.float32) * 0.15
    w3 = jax.random.normal(k4, (1, 2 * ndf, 1, 1), jnp.float32) * 0.1
    gamma = 1.0 + 0.1 * jax.random.normal(k5, (2 * ndf,), jnp.float32)
    beta = 0.1 * jax.random.normal(k6, (2 * ndf,), jnp.float32)

    out = pixel_discriminator_forward(x, w1, b1, w2, w3, gamma, beta)
    out = jax.block_until_ready(out)

    ref = _reference(x, w1, b1, w2, w3, gamma, beta)
    assert out.shape == (N, 1, H, W)
    assert jnp.allclose(out, ref, atol=1e-3, rtol=1e-3), (
        f"mismatch vs reference: max abs diff {jnp.max(jnp.abs(out - ref))}")

    print("KERNEL_OK")
</pallas_src>

<mosaic_0001>
module attributes {stable_mosaic.version = 11 : i64} {
  func.func @_pass1_kernel(%arg0: i32, %arg1: i32, %arg2: memref<1x4x256xf32, #tpu.memory_space<vmem>>, %arg3: memref<64x4xf32, #tpu.memory_space<vmem>>, %arg4: memref<64x1xf32, #tpu.memory_space<vmem>>, %arg5: memref<128x64xf32, #tpu.memory_space<vmem>>, %arg6: memref<1x128x256xf32, #tpu.memory_space<vmem>>, %arg7: memref<1x1x128x1xf32, #tpu.memory_space<vmem>>, %arg8: memref<1x1x128x1xf32, #tpu.memory_space<vmem>>) attributes {dimension_semantics = [#tpu.dimension_semantics<parallel>, #tpu.dimension_semantics<parallel>], iteration_bounds = array<i64: 2, 1>, scalar_prefetch = 0 : i64, scratch_operands = 0 : i64, tpu.core_type = #tpu.core_type<tc>, window_params = [{transform_indices = @transform_0, window_bounds = array<i64: 1, 4, 256>}, {pipeline_mode = #tpu.pipeline_mode<synchronous>, transform_indices = @transform_1, window_bounds = array<i64: 64, 4>}, {pipeline_mode = #tpu.pipeline_mode<synchronous>, transform_indices = @transform_2, window_bounds = array<i64: 64, 1>}, {pipeline_mode = #tpu.pipeline_mode<synchronous>, transform_indices = @transform_3, window_bounds = array<i64: 128, 64>}, {transform_indices = @transform_4, window_bounds = array<i64: 1, 128, 256>}, {transform_indices = @transform_5, window_bounds = array<i64: 1, 1, 128, 1>}, {transform_indices = @transform_6, window_bounds = array<i64: 1, 1, 128, 1>}]} {
    %c0 = arith.constant 0 : index
    %c0_0 = arith.constant 0 : index
    %0 = vector.load %arg3[%c0, %c0_0] : memref<64x4xf32, #tpu.memory_space<vmem>>, vector<64x4xf32>
    %c0_1 = arith.constant 0 : index
    %c0_2 = arith.constant 0 : index
    %c0_3 = arith.constant 0 : index
    %1 = vector.load %arg2[%c0_1, %c0_2, %c0_3] : memref<1x4x256xf32, #tpu.memory_space<vmem>>, vector<1x4x256xf32>
    %2 = vector.shape_cast %1 : vector<1x4x256xf32> to vector<4x256xf32>
    %cst = arith.constant dense<0.000000e+00> : vector<64x256xf32>
    %3 = tpu.matmul %0, %2, %cst {dimension_numbers = #tpu.dot_dimension_numbers<[1], [0], [0], [1], [0, 0, 1, 1], [], []>} : vector<64x4xf32>, vector<4x256xf32>, vector<64x256xf32> -> vector<64x256xf32>
    %c0_4 = arith.constant 0 : index
    %c0_5 = arith.constant 0 : index
    %4 = vector.load %arg4[%c0_4, %c0_5] : memref<64x1xf32, #tpu.memory_space<vmem>>, vector<64x1xf32>
    %5 = vector.broadcast %4 : vector<64x1xf32> to vector<64x256xf32>
    %6 = arith.addf %3, %5 : vector<64x256xf32>
    %cst_6 = arith.constant 0.000000e+00 : f32
    %7 = vector.broadcast %cst_6 : f32 to vector<64x256xf32>
    %8 = arith.cmpf ogt, %6, %7 : vector<64x256xf32>
    %cst_7 = arith.constant 2.000000e-01 : f32
    %9 = vector.broadcast %cst_7 : f32 to vector<64x256xf32>
    %10 = arith.mulf %9, %6 : vector<64x256xf32>
    %11 = arith.select %8, %6, %10 : vector<64x256xi1>, vector<64x256xf32>
    %c0_8 = arith.constant 0 : index
    %c0_9 = arith.constant 0 : index
    %12 = vector.load %arg5[%c0_8, %c0_9] : memref<128x64xf32, #tpu.memory_space<vmem>>, vector<128x64xf32>
    %cst_10 = arith.constant dense<0.000000e+00> : vector<128x256xf32>
    %13 = tpu.matmul %12, %11, %cst_10 {dimension_numbers = #tpu.dot_dimension_numbers<[1], [0], [0], [1], [0, 0, 1, 1], [], []>} : vector<128x64xf32>, vector<64x256xf32>, vector<128x256xf32> -> vector<128x256xf32>
    %c0_11 = arith.constant 0 : index
    %c0_12 = arith.constant 0 : index
    %c0_13 = arith.constant 0 : index
    %14 = vector.load %arg6[%c0_11, %c0_12, %c0_13] : memref<1x128x256xf32, #tpu.memory_space<vmem>>, vector<1x128x256xf32>
    %15 = vector.shape_cast %14 : vector<1x128x256xf32> to vector<128x256xf32>
    %16 = vector.shape_cast %13 : vector<128x256xf32> to vector<1x128x256xf32>
    tpu.vector_store %arg6[%c0_11, %c0_12, %c0_13], %16 {strides = array<i32>} : memref<1x128x256xf32, #tpu.memory_space<vmem>>, vector<1x128x256xf32>,
    %cst_14 = arith.constant dense<0.000000e+00> : vector<128xf32>
    %17 = vector.multi_reduction <add>, %13, %cst_14 [1] : vector<128x256xf32> to vector<128xf32>
    %18 = vector.shape_cast %17 : vector<128xf32> to vector<128x1xf32>
    %c0_15 = arith.constant 0 : index
    %c0_16 = arith.constant 0 : index
    %c0_17 = arith.constant 0 : index
    %c0_18 = arith.constant 0 : index
    %19 = vector.load %arg7[%c0_15, %c0_16, %c0_17, %c0_18] : memref<1x1x128x1xf32, #tpu.memory_space<vmem>>, vector<1x1x128x1xf32>
    %20 = vector.shape_cast %19 : vector<1x1x128x1xf32> to vector<128x1xf32>
    %21 = vector.shape_cast %18 : vector<128x1xf32> to vector<1x1x128x1xf32>
    tpu.vector_store %arg7[%c0_15, %c0_16, %c0_17, %c0_18], %21 {strides = array<i32>} : memref<1x1x128x1xf32, #tpu.memory_space<vmem>>, vector<1x1x128x1xf32>,
    %22 = arith.mulf %13, %13 : vector<128x256xf32>
    %cst_19 = arith.constant dense<0.000000e+00> : vector<128xf32>
    %23 = vector.multi_reduction <add>, %22, %cst_19 [1] : vector<128x256xf32> to vector<128xf32>
    %24 = vector.shape_cast %23 : vector<128xf32> to vector<128x1xf32>
    %c0_20 = arith.constant 0 : index
    %c0_21 = arith.constant 0 : index
    %c0_22 = arith.constant 0 : index
    %c0_23 = arith.constant 0 : index
    %25 = vector.load %arg8[%c0_20, %c0_21, %c0_22, %c0_23] : memref<1x1x128x1xf32, #tpu.memory_space<vmem>>, vector<1x1x128x1xf32>
    %26 = vector.shape_cast %25 : vector<1x1x128x1xf32> to vector<128x1xf32>
    %27 = vector.shape_cast %24 : vector<128x1xf32> to vector<1x1x128x1xf32>
    tpu.vector_store %arg8[%c0_20, %c0_21, %c0_22, %c0_23], %27 {strides = array<i32>} : memref<1x1x128x1xf32, #tpu.memory_space<vmem>>, vector<1x1x128x1xf32>,
    return
  }
  func.func @transform_0(%arg0: i32, %arg1: i32) -> (i32, i32, i32) {
    %c0_i32 = arith.constant 0 : i32
    %c0_i32_0 = arith.constant 0 : i32
    return %arg0, %c0_i32, %arg1 : i32, i32, i32
  }
  func.func @transform_1(%arg0: i32, %arg1: i32) -> (i32, i32) {
    %c0_i32 = arith.constant 0 : i32
    %c0_i32_0 = arith.constant 0 : i32
    %c0_i32_1 = arith.constant 0 : i32
    return %c0_i32, %c0_i32_0 : i32, i32
  }
  func.func @transform_2(%arg0: i32, %arg1: i32) -> (i32, i32) {
    %c0_i32 = arith.constant 0 : i32
    %c0_i32_0 = arith.constant 0 : i32
    %c0_i32_1 = arith.constant 0 : i32
    return %c0_i32, %c0_i32_0 : i32, i32
  }
  func.func @transform_3(%arg0: i32, %arg1: i32) -> (i32, i32) {
    %c0_i32 = arith.constant 0 : i32
    %c0_i32_0 = arith.constant 0 : i32
    %c0_i32_1 = arith.constant 0 : i32
    return %c0_i32, %c0_i32_0 : i32, i32
  }
  func.func @transform_4(%arg0: i32, %arg1: i32) -> (i32, i32, i32) {
    %c0_i32 = arith.constant 0 : i32
    %c0_i32_0 = arith.constant 0 : i32
    return %arg0, %c0_i32, %arg1 : i32, i32, i32
  }
  func.func @transform_5(%arg0: i32, %arg1: i32) -> (i32, i32, i32, i32) {
    %c0_i32 = arith.constant 0 : i32
    %c0_i32_0 = arith.constant 0 : i32
    %c0_i32_1 = arith.constant 0 : i32
    return %arg0, %arg1, %c0_i32, %c0_i32_0 : i32, i32, i32, i32
  }
  func.func @transform_6(%arg0: i32, %arg1: i32) -> (i32, i32, i32, i32) {
    %c0_i32 = arith.constant 0 : i32
    %c0_i32_0 = arith.constant 0 : i32
    %c0_i32_1 = arith.constant 0 : i32
    return %arg0, %arg1, %c0_i32, %c0_i32_0 : i32, i32, i32, i32
  }
}

</mosaic_0001>

<bundles_post_ra>
// kernel: tpu_custom_call.1
= control target key start
LH: loop header
LB: loop body
LE: loop exit
PB: predicated region body
PF: predicated region fallthrough
CT: control target
= control target key end

     0   :  { %12 = vsyncpa [#allocation3], 0  ;;  %s1825_s0 = inlined_call_operand.vmem [shape: f32[2,4,256], index: 0, kind: input, shape index: {}]   ;;  %s1826_s1 = inlined_call_operand.vmem [shape: f32[64,4], index: 1, kind: input, shape index: {}]   ;;  %s1827_s2 = inlined_call_operand.vmem [shape: f32[64,1], index: 2, kind: input, shape index: {}]   ;;  %s1828_s3 = inlined_call_operand.vmem [shape: f32[128,64], index: 3, kind: input, shape index: {}]   ;;  %s1829_s4 = inlined_call_operand.hbm [shape: f32[2,128,256], index: 4, kind: output, shape index: {0}]   ;;  %s1830_s5 = inlined_call_operand.vmem [shape: f32[2,1,128,1], index: 5, kind: output, shape index: {1}]   ;;  %s1831_s6 = inlined_call_operand.vmem [shape: f32[2,1,128,1], index: 6, kind: output, shape index: {2}]  }
   0x1   :  { %14 = vsyncpa [#allocation3 + $0x1], 0  ;;  %s1449_s21 = smov 0   ;;  %s1451_s22 = smov 0  }
   0x2   :  { %s1453_s23 = smov 0   ;;  %s1455_s24 = smov 0  }
   0x3   :  { %s1457_s25 = smov 0   ;;  %s1459_s26 = smov 0  }
   0x4 LB: > { %s1196_s27 = sadd.s32 4294967295, %s1407_s26   ;;  %s1197_s28 = sadd.s32 4294967294, %s1407_s26   ;;  %s1407_s26 = sphi %s1459_s26, %s20_s26   ;;  %s1403_s25 = sphi %s1457_s25, %s1838_s25   ;;  %s1399_s24 = sphi %s1455_s24, %s1837_s24   ;;  %s1395_s23 = sphi %s1453_s23, %s1836_s23   ;;  %s1391_s22 = sphi %s1451_s22, %s1835_s22   ;;  %s1387_s21 = sphi %s1449_s21, %s1834_s21  }
   0x5   : > { %s32_s29 = sadd.s32 1, %s1403_s25  ;;  %s132_s30 = sadd.s32 1, %s1395_s23 }
   0x6   : > { %p34_p0 = scmp.ge.s32.totalorder %s32_s29, 2  ;;  %p142_p1 = scmp.ne.s32.totalorder %s1395_s23, %s1391_s22 }
   0x7   : > { %p143_p2 = scmp.eq.s32.totalorder %s1196_s27, 1  ;;  %p148_p3 = scmp.ne.s32.totalorder %s1391_s22, %s1387_s21 }
   0x8   : > { %s1840_s29 = smov (%p34_p0, %s32_s29), 0  ;;  %p149_p5 = scmp.eq.s32.totalorder %s1197_s28, 1 }
   0x9   : > { %p1489_p4 = por %p143_p2, %p142_p1  ;;  %s127_s8 = ssub.s32 %s1403_s25, %s1840_s29 }
   0xa   : > { %p1200_p6 = scmp.ge.s32.totalorder %s1407_s26, 1  ;;  %p130_p7 = scmp.eq.s32.totalorder %s127_s8, 0 }
   0xb   : > { %p1496_p8 = por %p149_p5, %p148_p3  ;;  %p245_p9 = scmp.lt.s32.totalorder %s1407_s26, 3 }
   0xc   : > { %s1502_s10 = scalar_select %p130_p7, %s1395_s23, %s132_s30  }
   0xd   : > { %p246_p10 = pnand %p1200_p6, %p245_p9 }
   0xe   : > { %p298_p11 = scmp.lt.s32.totalorder (!%p246_p10), %s1399_s24, 1  ;;  %v1409_v0 = vmov (!%p246_p10), 0.0   ;;  %v1410_v1 = vmov (!%p246_p10), 0   ;;  %v335_v2 = vld [vmem:[%s1827_s2] sm:$0xff] (!%p246_p10)  ;;  %v337_v3 = vld [vmem:[%s1827_s2 + $0x10] sm:$0xff] (!%p246_p10)  ;;  %v336_v4 = vld [vmem:[%s1827_s2 + $0x8] sm:$0xff] (!%p246_p10) }
   0xf   : > { %249 = sbr.rel (%p246_p10) target bundleno = 705 (0x2c1), region = 36  ;;  %479 = vmatprep.mubr.f32.mxu0 (!%p246_p10), %v1409_v0  ;;  %735 = vmatprep.mubr.f32.mxu1 (!%p246_p10), %v1409_v0  ;;  %v338_v5 = vld [vmem:[%s1827_s2 + $0x18] sm:$0xff] (!%p246_p10)  ;;  %vm410_vm0 = vcmask (!%p246_p10), 1043456   ;;  %v326_v8 = vld [vmem:[%s1826_s1] sm:$0xff] (!%p246_p10)  ;;  %vm385_vm1 = vcmask (!%p246_p10), 31744   ;;  %v340_v10 = vld [vmem:[%s1827_s2 + $0x28] sm:$0xff] (!%p246_p10) }
  0x10   : > { %1326 = vset.pattern.permute.xlu0 (!%p246_p10), %v1410_v1  ;;  %1327 = vset.pattern.permute.xlu1 (!%p246_p10), %v1410_v1  ;;  %v339_v9 = vld [vmem:[%s1827_s2 + $0x20] sm:$0xff] (!%p246_p10)  ;;  %v327_v11 = vld [vmem:[%s1826_s1 + $0x8] sm:$0xff] (!%p246_p10)  ;;  %v341_v12 = vld [vmem:[%s1827_s2 + $0x30] sm:$0xff] (!%p246_p10)  ;;  %s272_s15 = sand.u32 (!%p246_p10), 1, %s1391_s22   ;;  %s1242_s18 = sshll.u32 (!%p246_p10), %s1399_s24, 12 }
  0x11   : > { %345 = vperm.xlu0 (!%p246_p10), %1326, %v335_v2   ;;  %355 = vperm.xlu1 (!%p246_p10), %1327, %v337_v3   ;;  %v342_v13 = vld [vmem:[%s1827_s2 + $0x38] sm:$0xff] (!%p246_p10)  ;;  %v328_v14 = vld [vmem:[%s1826_s1 + $0x10] sm:$0xff] (!%p246_p10)  ;;  %v330_v16 = vld [vmem:[%s1826_s1 + $0x20] sm:$0xff] (!%p246_p10)  ;;  %s1698_s28 = scalar_lea.hbm (!%p246_p10), %s1829_s4, %s1242_s18  ;;  %s1704_s30 = scalar_lea.sflag (!%p246_p10), [#allocation3], %s272_s15 }
  0x12   : > { %v329_v15 = vld [vmem:[%s1826_s1 + $0x18] sm:$0xff] (!%p246_p10)  ;;  %v331_v17 = vld [vmem:[%s1826_s1 + $0x28] sm:$0xff] (!%p246_p10)  ;;  %v332_v18 = vld [vmem:[%s1826_s1 + $0x30] sm:$0xff] (!%p246_p10) }
  0x13   : > { %v333_v19 = vld [vmem:[%s1826_s1 + $0x38] sm:$0xff] (!%p246_p10) }
  0x15   : > { %350 = vperm.xlu0 (!%p246_p10), %1326, %v336_v4   ;;  %360 = vperm.xlu1 (!%p246_p10), %1327, %v338_v5  }
  0x16   : > { %s1508_s11 = scalar_select %p298_p11, %s1399_s24, 1 }
  0x17   : > { %s1411_s24 = smov [#allocation2]  }
  0x18   : > { %s1239_s16 = sshll.u32 %s1508_s11, 3  ;;  %s1333_s12 = sshll.u32 %s1411_s24, 4  ;;  %s1334_s12 = int_to_ptr.vmem [resolvable:$false] %s1333_s12 }
  0x19   : > { %s305_s19 = scalar_lea.vmem %s1825_s0, %s1239_s16  ;;  %365 = vperm.xlu0 %1326, %v339_v9   ;;  %370 = vperm.xlu1 %1327, %v340_v10   ;;  %s1201_s16 = sshll.u32 %s272_s15, 8 }
  0x1a   : > { %v334_v6 = vld [vmem:[%s305_s19] sm:$0xff]  ;;  %s1659_s17 = scalar_lea.vmem [#allocation2], %s1201_s16  ;;  %s1335_s13 = scalar_lea.vmem %s1334_s12, 8192 }
  0x1b   : > { %v384_v7 = vcombine.high %v334_v6, %v334_v6  ;;  %s1029_s19 = sshll.u32 %s1659_s17, 4  ;;  %s1700_s19 = int_to_ptr.vmem [resolvable:$true] %s1029_s19 }
  0x1c   : > { %s1329_s8 = scalar_lea.vmem %s1700_s19, 4096  ;;  %p1336_p1 = scmp.lt.s32.totalorder %s1700_s19, %s1334_s12 }
  0x1d   : > { %1208 = vmatprep.subr.msk.mxu0 %vm410_vm0, %v384_v7  ;;  %375 = vperm.xlu0 %1326, %v341_v12   ;;  %p1330_p12 = scmp.ne.s32.totalorder %s1700_s19, %s1329_s8  ;;  %p1337_p2 = scmp.lt.s32.totalorder %s1335_s13, %s1329_s8 }
  0x1e   : > { %1209 = vmatpush1.msk.msra.mxu0 %vm410_vm0, %v334_v6  ;;  %380 = vperm.xlu1 %1327, %v342_v13  }
  0x1f   : > { %1210 = vmatmul.mubr.msk.f32.vlgmr.msra.gmra.mrb[0].mxu0 %vm385_vm1, %v326_v8  ;;  %p1331_p13 = pnand %p1330_p12, %p1489_p4  ;;  %p1338_p3 = por %p1337_p2, %p1336_p1 }
  0x20   : > { %485 = vmatprep.mubr.f32.mxu0 %v1409_v0 }
  0x21   : > { %p1332_p0 = pneg %p1331_p13 }
  0x23   : > { %1211 = vmatmul.mubr.msk.f32.gmra.mrb[2].mxu0 %vm385_vm1, %v327_v11  ;;  %p1339_p5 = pnand %p1338_p3, %p1332_p0 }
  0x24   : > { %491 = vmatprep.mubr.f32.mxu0 %v1409_v0 }
  0x27   : > { %1212 = vmatmul.mubr.msk.f32.gmra.mrb[4].mxu0 %vm385_vm1, %v328_v14 }
  0x28   : > { %497 = vmatprep.mubr.f32.mxu0 %v1409_v0 }
  0x2b   : > { %1213 = vmatmul.mubr.msk.f32.gmra.mrb[6].mxu0 %vm385_vm1, %v329_v15 }
  0x2c   : > { %503 = vmatprep.mubr.f32.mxu0 %v1409_v0 }
  0x2f   : > { %1214 = vmatmul.mubr.msk.f32.gmra.mrb[8].mxu0 %vm385_vm1, %v330_v16 }
  0x30   : > { %509 = vmatprep.mubr.f32.mxu0 %v1409_v0 }
  0x33   : > { %1215 = vmatmul.mubr.msk.f32.gmra.mrb[10].mxu0 %vm385_vm1, %v331_v17 }
  0x34   : > { %515 = vmatprep.mubr.f32.mxu0 %v1409_v0 }
  0x37   : > { %1216 = vmatmul.mubr.msk.f32.gmra.mrb[12].mxu0 %vm385_vm1, %v332_v18 }
  0x38   : > { %521 = vmatprep.mubr.f32.mxu0 %v1409_v0 }
  0x3b   : > { %1217 = vmatmul.mubr.msk.f32.gmra.mrb[14].mxu0 %vm385_vm1, %v333_v19 }
  0x3c   : > { %705 = vmatprep.mubr.f32.mxu0 %v1409_v0 }
  0x90   : > { %v346_v20 = vpop.permute.xlu0 %345  ;;  %v356_v30 = vpop.permute.xlu1 %355 }
  0x94   : > { %v351_v24 = vpop.permute.xlu0 %350  ;;  %v361_v45 = vpop.permute.xlu1 %360 }
  0x98   : > { %v366_v53 = vpop.permute.xlu0 %365  ;;  %v371_v2 = vpop.permute.xlu1 %370 }
  0x9c   : > { %v376_v10 = vpop.permute.xlu0 %375 }
  0xf2   : > { %v481_v21 = vpop.f32.mrb[0].mxu0 }
  0xf3   : > { %v482_v22 = vadd.f32 %v481_v21, %v346_v20  ;;  %v483_v23 = vpop.f32.mrb[1].mxu0 }
  0xf4   : > { %v484_v25 = vadd.f32 %v483_v23, %v346_v20 }
  0xf5   : > { %v544_v27 = vmul.f32 0.2, %v482_v22  ;;  %vm528_vm2 = vcmp.gt.f32.partialorder %v482_v22, 0.0 }
  0xf6   : > { %v487_v26 = vpop.f32.mrb[2].mxu0  ;;  %v545_v31 = vmul.f32 0.2, %v484_v25  ;;  %vm529_vm3 = vcmp.gt.f32.partialorder %v484_v25, 0.0 }
  0xf7   : > { %v488_v28 = vadd.f32 %v487_v26, %v351_v24  ;;  %v489_v29 = vpop.f32.mrb[3].mxu0  ;;  %v560_v36 = vsel %vm528_vm2, %v482_v22, %v544_v27  ;;  %v381_v22 = vpop.permute.xlu1 %380  ;;  %vm592_vm2 = vcmask 523264  }
  0xf8   : > { %v490_v32 = vadd.f32 %v489_v29, %v351_v24  ;;  %v561_v42 = vsel %vm529_vm3, %v484_v25, %v545_v31 }
  0xf9   : > { %vm530_vm4 = vcmp.gt.f32.partialorder %v488_v28, 0.0  ;;  %v546_v33 = vmul.f32 0.2, %v488_v28 }
  0xfa   : > { %vm531_vm5 = vcmp.gt.f32.partialorder %v490_v32, 0.0  ;;  %v547_v34 = vmul.f32 0.2, %v490_v32  ;;  %v493_v35 = vpop.f32.mrb[4].mxu0 }
  0xfb   : > { %v562_v37 = vsel %vm530_vm4, %v488_v28, %v546_v33  ;;  %v494_v38 = vadd.f32 %v493_v35, %v356_v30  ;;  %v495_v39 = vpop.f32.mrb[5].mxu0 }
  0xfc   : > { %v1245_v40 = vpack.c.bf16 %v562_v37, %v560_v36  ;;  %v496_v41 = vadd.f32 %v495_v39, %v356_v30  ;;  %v563_v43 = vsel %vm531_vm5, %v490_v32, %v547_v34  ;;  %v576_v37 = vld [vmem:[%s1828_s3] sm:$0xff]  ;;  %v577_v39 = vld [vmem:[%s1828_s3 + $0x8] sm:$0xff] }
  0xfd   : > { %v1243_v44 = vpack.c.bf16 %v563_v43, %v561_v42  ;;  %v548_v47 = vmul.f32 0.2, %v494_v38  ;;  %vm532_vm6 = vcmp.gt.f32.partialorder %v494_v38, 0.0  ;;  %v583_v42 = vld [vmem:[%s1828_s3 + $0x38] sm:$0xff]  ;;  %v584_v43 = vld [vmem:[%s1828_s3 + $0x40] sm:$0xff] }
  0xfe   : > { %v499_v46 = vpop.f32.mrb[6].mxu0  ;;  %v549_v50 = vmul.f32 0.2, %v496_v41  ;;  %vm533_vm7 = vcmp.gt.f32.partialorder %v496_v41, 0.0 }
  0xff   : > { %v500_v48 = vadd.f32 %v499_v46, %v361_v45  ;;  %v501_v49 = vpop.f32.mrb[7].mxu0  ;;  %1244 = vmatprep.subr.bf16.mxu0 %v1243_v44  ;;  %1259 = vmatprep.subr.bf16.mxu1 %v1243_v44  ;;  %v564_v56 = vsel %vm532_vm6, %v494_v38, %v548_v47  ;;  %v581_v38 = vld [vmem:[%s1828_s3 + $0x28] sm:$0xff]  ;;  %v579_v44 = vld [vmem:[%s1828_s3 + $0x18] sm:$0xff]  ;;  %v586_v47 = vld [vmem:[%s1828_s3 + $0x50] sm:$0xff] }
 0x100   : > { %v502_v51 = vadd.f32 %v501_v49, %v361_v45  ;;  %1246 = vmatpush1.bf16.msra.mxu0 %v1245_v40  ;;  %1263 = vmatpush1.bf16.msra.mxu1 %v1245_v40  ;;  %v565_v62 = vsel %vm533_vm7, %v496_v41, %v549_v50  ;;  %v582_v40 = vld [vmem:[%s1828_s3 + $0x30] sm:$0xff]  ;;  %v580_v45 = vld [vmem:[%s1828_s3 + $0x20] sm:$0xff]  ;;  %v585_v46 = vld [vmem:[%s1828_s3 + $0x48] sm:$0xff] }
 0x101   : > { %vm534_vm8 = vcmp.gt.f32.partialorder %v500_v48, 0.0  ;;  %v550_v52 = vmul.f32 0.2, %v500_v48  ;;  %v578_v41 = vld [vmem:[%s1828_s3 + $0x10] sm:$0xff]  ;;  %v588_v49 = vld [vmem:[%s1828_s3 + $0x60] sm:$0xff]  ;;  %v589_v50 = vld [vmem:[%s1828_s3 + $0x68] sm:$0xff] }
 0x102   : > { %vm535_vm9 = vcmp.gt.f32.partialorder %v502_v51, 0.0  ;;  %v551_v54 = vmul.f32 0.2, %v502_v51  ;;  %v505_v55 = vpop.f32.mrb[8].mxu0 }
 0x103   : > { %v566_v57 = vsel %vm534_vm8, %v500_v48, %v550_v52  ;;  %v506_v58 = vadd.f32 %v505_v55, %v366_v53  ;;  %v507_v59 = vpop.f32.mrb[9].mxu0  ;;  %v587_v48 = vld [vmem:[%s1828_s3 + $0x58] sm:$0xff] }
 0x104   : > { %v1249_v60 = vpack.c.bf16 %v566_v57, %v564_v56  ;;  %v508_v61 = vadd.f32 %v507_v59, %v366_v53  ;;  %v567_v63 = vsel %vm535_vm9, %v502_v51, %v551_v54  ;;  %v590_v51 = vld [vmem:[%s1828_s3 + $0x70] sm:$0xff]  ;;  %v591_v52 = vld [vmem:[%s1828_s3 + $0x78] sm:$0xff] }
 0x105   : > { %v1247_v1 = vpack.c.bf16 %v567_v63, %v565_v62  ;;  %v552_v4 = vmul.f32 0.2, %v506_v58  ;;  %vm536_vm10 = vcmp.gt.f32.partialorder %v506_v58, 0.0 }
 0x106   : > { %v511_v3 = vpop.f32.mrb[10].mxu0  ;;  %v553_v7 = vmul.f32 0.2, %v508_v61  ;;  %vm537_vm11 = vcmp.gt.f32.partialorder %v508_v61, 0.0 }
 0x107   : > { %v512_v5 = vadd.f32 %v511_v3, %v371_v2  ;;  %v513_v6 = vpop.f32.mrb[11].mxu0  ;;  %1248 = vmatprep.subr.bf16.mxu0 %v1247_v1  ;;  %1260 = vmatprep.subr.bf16.mxu1 %v1247_v1  ;;  %v568_v13 = vsel %vm536_vm10, %v506_v58, %v552_v4 }
 0x108   : > { %v514_v8 = vadd.f32 %v513_v6, %v371_v2  ;;  %1250 = vmatpush1.bf16.msra.mxu0 %v1249_v60  ;;  %1264 = vmatpush1.bf16.msra.mxu1 %v1249_v60  ;;  %v569_v19 = vsel %vm537_vm11, %v508_v61, %v553_v7 }
 0x109   : > { %vm538_vm12 = vcmp.gt.f32.partialorder %v512_v5, 0.0  ;;  %v554_v9 = vmul.f32 0.2, %v512_v5 }
 0x10a   : > { %vm539_vm13 = vcmp.gt.f32.partialorder %v514_v8, 0.0  ;;  %v555_v11 = vmul.f32 0.2, %v514_v8  ;;  %v517_v12 = vpop.f32.mrb[12].mxu0 }
 0x10b   : > { %v570_v14 = vsel %vm538_vm12, %v512_v5, %v554_v9  ;;  %v518_v15 = vadd.f32 %v517_v12, %v376_v10  ;;  %v519_v16 = vpop.f32.mrb[13].mxu0 }
 0x10c   : > { %v1253_v17 = vpack.c.bf16 %v570_v14, %v568_v13  ;;  %v520_v18 = vadd.f32 %v519_v16, %v376_v10  ;;  %v571_v20 = vsel %vm539_vm13, %v514_v8, %v555_v11 }
 0x10d   : > { %v1251_v21 = vpack.c.bf16 %v571_v20, %v569_v19  ;;  %v556_v24 = vmul.f32 0.2, %v518_v15  ;;  %vm540_vm14 = vcmp.gt.f32.partialorder %v518_v15, 0.0 }
 0x10e   : > { %v523_v23 = vpop.f32.mrb[14].mxu0  ;;  %v557_v27 = vmul.f32 0.2, %v520_v18  ;;  %vm541_vm15 = vcmp.gt.f32.partialorder %v520_v18, 0.0 }
 0x10f   : > { %v524_v25 = vadd.f32 %v523_v23, %v381_v22  ;;  %v525_v26 = vpop.f32.mrb[15].mxu0  ;;  %1252 = vmatprep.subr.bf16.mxu0 %v1251_v21  ;;  %1261 = vmatprep.subr.bf16.mxu1 %v1251_v21  ;;  %v572_v31 = vsel %vm540_vm14, %v518_v15, %v556_v24 }
 0x110   : > { %v526_v28 = vadd.f32 %v525_v26, %v381_v22  ;;  %1254 = vmatpush1.bf16.msra.mxu0 %v1253_v17  ;;  %1265 = vmatpush1.bf16.msra.mxu1 %v1253_v17  ;;  %v573_v34 = vsel %vm541_vm15, %v520_v18, %v557_v27 }
 0x111   : > { %vm542_vm0 = vcmp.gt.f32.partialorder %v524_v25, 0.0  ;;  %v558_v29 = vmul.f32 0.2, %v524_v25 }
 0x112   : > { %vm543_vm1 = vcmp.gt.f32.partialorder %v526_v28, 0.0  ;;  %v559_v30 = vmul.f32 0.2, %v526_v28 }
 0x113   : > { %v574_v32 = vsel %vm542_vm0, %v524_v25, %v558_v29 }
 0x114   : > { %v1257_v33 = vpack.c.bf16 %v574_v32, %v572_v31  ;;  %v575_v35 = vsel %vm543_vm1, %v526_v28, %v559_v30 }
 0x115   : > { %v1255_v36 = vpack.c.bf16 %v575_v35, %v573_v34 }
 0x117   : > { %1256 = vmatprep.subr.bf16.mxu0 %v1255_v36  ;;  %1262 = vmatprep.subr.bf16.mxu1 %v1255_v36 }
 0x118   : > { %1258 = vmatpush1.bf16.msra.mxu0 %v1257_v33  ;;  %1266 = vmatpush1.bf16.msra.mxu1 %v1257_v33 }
 0x11b   : > { %1218 = vmatmul.mubr.msk.f32.vlgmr.msra.gmra.mrb[16].mxu0 %vm592_vm2, %v576_v37  ;;  %1223 = vmatmul.mubr.msk.f32.vlgmr.msra.gmra.mrb[0].mxu1 %vm592_vm2, %v581_v38 }
 0x11c   : > { %711 = vmatprep.mubr.f32.mxu0 %v1409_v0  ;;  %741 = vmatprep.mubr.f32.mxu1 %v1409_v0 }
 0x11f   : > { %1219 = vmatmul.mubr.msk.f32.gmra.mrb[18].mxu0 %vm592_vm2, %v577_v39  ;;  %1224 = vmatmul.mubr.msk.f32.gmra.mrb[2].mxu1 %vm592_vm2, %v582_v40 }
 0x120   : > { %717 = vmatprep.mubr.f32.mxu0 %v1409_v0  ;;  %747 = vmatprep.mubr.f32.mxu1 %v1409_v0 }
 0x123   : > { %1220 = vmatmul.mubr.msk.f32.gmra.mrb[20].mxu0 %vm592_vm2, %v578_v41  ;;  %1225 = vmatmul.mubr.msk.f32.gmra.mrb[4].mxu1 %vm592_vm2, %v583_v42 }
 0x124   : > { %753 = vmatprep.mubr.f32.mxu1 %v1409_v0  ;;  %723 = vmatprep.mubr.f32.mxu0 %v1409_v0 }
 0x127   : > { %1226 = vmatmul.mubr.msk.f32.gmra.mrb[6].mxu1 %vm592_vm2, %v584_v43  ;;  %1221 = vmatmul.mubr.msk.f32.gmra.mrb[22].mxu0 %vm592_vm2, %v579_v44 }
 0x128   : > { %729 = vmatprep.mubr.f32.mxu0 %v1409_v0  ;;  %759 = vmatprep.mubr.f32.mxu1 %v1409_v0 }
 0x12b   : > { %1222 = vmatmul.mubr.msk.f32.gmra.mrb[24].mxu0 %vm592_vm2, %v580_v45  ;;  %1227 = vmatmul.mubr.msk.f32.gmra.mrb[8].mxu1 %vm592_vm2, %v585_v46 }
 0x12c   : > { %765 = vmatprep.mubr.f32.mxu1 %v1409_v0 }
 0x12f   : > { %1228 = vmatmul.mubr.msk.f32.gmra.mrb[10].mxu1 %vm592_vm2, %v586_v47 }
 0x130   : > { %771 = vmatprep.mubr.f32.mxu1 %v1409_v0 }
 0x133   : > { %1229 = vmatmul.mubr.msk.f32.gmra.mrb[12].mxu1 %vm592_vm2, %v587_v48 }
 0x134   : > { %777 = vmatprep.mubr.f32.mxu1 %v1409_v0 }
 0x137   : > { %1230 = vmatmul.mubr.msk.f32.gmra.mrb[14].mxu1 %vm592_vm2, %v588_v49 }
 0x138   : > { %783 = vmatprep.mubr.f32.mxu1 %v1409_v0 }
 0x13b   : > { %1231 = vmatmul.mubr.msk.f32.gmra.mrb[16].mxu1 %vm592_vm2, %v589_v50 }
 0x13c   : > { %789 = vmatprep.mubr.f32.mxu1 %v1409_v0 }
 0x13f   : > { %1232 = vmatmul.mubr.msk.f32.gmra.mrb[18].mxu1 %vm592_vm2, %v590_v51 }
 0x140   : > { %795 = vmatprep.mubr.f32.mxu1 %v1409_v0 }
 0x143   : > { %1233 = vmatmul.mubr.msk.f32.gmra.mrb[20].mxu1 %vm592_vm2, %v591_v52 }
 0x1ee   : > { %v707_v53 = vpop.f32.mrb[16].mxu0  ;;  %v737_v54 = vpop.f32.mrb[0].mxu1 }
 0x1ef   : > { %802 = vst [vmem:[%s1659_s17] sm:$0xff] %v707_v53  ;;  %v709_v55 = vpop.f32.mrb[17].mxu0  ;;  %812 = vst [vmem:[%s1659_s17 + $0x50] sm:$0xff] %v737_v54  ;;  %v739_v0 = vpop.f32.mrb[1].mxu1  ;;  %v899_v56 = vmul.f32 %v707_v53, %v707_v53  ;;  %v909_v57 = vmul.f32 %v737_v54, %v737_v54 }
 0x1f0   : > { %803 = vst [vmem:[%s1659_s17 + $0x8] sm:$0xff] %v709_v55  ;;  %v834_v58 = vadd.f32 %v709_v55, %v707_v53  ;;  %813 = vst [vmem:[%s1659_s17 + $0x58] sm:$0xff] %v739_v0  ;;  %v900_v59 = vmul.f32 %v709_v55, %v709_v55  ;;  %v849_v60 = vadd.f32 %v739_v0, %v737_v54 }
 0x1f1   : > { %v910_v61 = vmul.f32 %v739_v0, %v739_v0 }
 0x1f2   : > { %835 = vadd.xlane.f32.xlu0 %v834_v58  ;;  %v931_v62 = vadd.f32 %v900_v59, %v899_v56  ;;  %v713_v63 = vpop.f32.mrb[18].mxu0  ;;  %v743_v1 = vpop.f32.mrb[2].mxu1 }
 0x1f3   : > { %v946_v2 = vadd.f32 %v910_v61, %v909_v57  ;;  %804 = vst [vmem:[%s1659_s17 + $0x10] sm:$0xff] %v713_v63  ;;  %v715_v3 = vpop.f32.mrb[19].mxu0  ;;  %814 = vst [vmem:[%s1659_s17 + $0x60] sm:$0xff] %v743_v1  ;;  %v745_v4 = vpop.f32.mrb[3].mxu1  ;;  %v901_v5 = vmul.f32 %v713_v63, %v713_v63  ;;  %v911_v6 = vmul.f32 %v743_v1, %v743_v1 }
 0x1f4   : > { %932 = vadd.xlane.f32.xlu1 %v931_v62  ;;  %805 = vst [vmem:[%s1659_s17 + $0x18] sm:$0xff] %v715_v3  ;;  %v837_v7 = vadd.f32 %v715_v3, %v713_v63  ;;  %815 = vst [vmem:[%s1659_s17 + $0x68] sm:$0xff] %v745_v4  ;;  %v902_v8 = vmul.f32 %v715_v3, %v715_v3  ;;  %v852_v9 = vadd.f32 %v745_v4, %v743_v1 }
 0x1f5   : > { %v912_v10 = vmul.f32 %v745_v4, %v745_v4 }
 0x1f6   : > { %850 = vadd.xlane.f32.xlu0 %v849_v60  ;;  %v934_v11 = vadd.f32 %v902_v8, %v901_v5  ;;  %v719_v12 = vpop.f32.mrb[20].mxu0  ;;  %v749_v13 = vpop.f32.mrb[4].mxu1 }
 0x1f7   : > { %v949_v14 = vadd.f32 %v912_v10, %v911_v6  ;;  %806 = vst [vmem:[%s1659_s17 + $0x20] sm:$0xff] %v719_v12  ;;  %v721_v15 = vpop.f32.mrb[21].mxu0  ;;  %816 = vst [vmem:[%s1659_s17 + $0x70] sm:$0xff] %v749_v13  ;;  %v751_v16 = vpop.f32.mrb[5].mxu1  ;;  %v903_v17 = vmul.f32 %v719_v12, %v719_v12  ;;  %v913_v18 = vmul.f32 %v749_v13, %v749_v13 }
 0x1f8   : > { %838 = vadd.xlane.f32.xlu1 %v837_v7  ;;  %807 = vst [vmem:[%s1659_s17 + $0x28] sm:$0xff] %v721_v15  ;;  %v840_v19 = vadd.f32 %v721_v15, %v719_v12  ;;  %817 = vst [vmem:[%s1659_s17 + $0x78] sm:$0xff] %v751_v16  ;;  %v904_v20 = vmul.f32 %v721_v15, %v721_v15  ;;  %v855_v21 = vadd.f32 %v751_v16, %v749_v13 }
 0x1f9   : > { %v914_v22 = vmul.f32 %v751_v16, %v751_v16 }
 0x1fa   : > { %947 = vadd.xlane.f32.xlu0 %v946_v2  ;;  %v755_v23 = vpop.f32.mrb[6].mxu1  ;;  %v937_v24 = vadd.f32 %v904_v20, %v903_v17  ;;  %v725_v26 = vpop.f32.mrb[22].mxu0 }
 0x1fb   : > { %v952_v25 = vadd.f32 %v914_v22, %v913_v18  ;;  %818 = vst [vmem:[%s1659_s17 + $0x80] sm:$0xff] %v755_v23  ;;  %v757_v27 = vpop.f32.mrb[7].mxu1  ;;  %808 = vst [vmem:[%s1659_s17 + $0x30] sm:$0xff] %v725_v26  ;;  %v727_v28 = vpop.f32.mrb[23].mxu0  ;;  %v915_v29 = vmul.f32 %v755_v23, %v755_v23  ;;  %v905_v30 = vmul.f32 %v725_v26, %v725_v26 }
 0x1fc   : > { %853 = vadd.xlane.f32.xlu1 %v852_v9  ;;  %819 = vst [vmem:[%s1659_s17 + $0x88] sm:$0xff] %v757_v27  ;;  %v858_v31 = vadd.f32 %v757_v27, %v755_v23  ;;  %809 = vst [vmem:[%s1659_s17 + $0x38] sm:$0xff] %v727_v28  ;;  %v916_v32 = vmul.f32 %v757_v27, %v757_v27  ;;  %v843_v33 = vadd.f32 %v727_v28, %v725_v26 }
 0x1fd   : > { %v906_v34 = vmul.f32 %v727_v28, %v727_v28 }
 0x1fe   : > { %935 = vadd.xlane.f32.xlu0 %v934_v11  ;;  %v955_v35 = vadd.f32 %v916_v32, %v915_v29  ;;  %v731_v36 = vpop.f32.mrb[24].mxu0  ;;  %v761_v37 = vpop.f32.mrb[8].mxu1 }
 0x1ff   : > { %v940_v38 = vadd.f32 %v906_v34, %v905_v30  ;;  %810 = vst [vmem:[%s1659_s17 + $0x40] sm:$0xff] %v731_v36  ;;  %v733_v39 = vpop.f32.mrb[25].mxu0  ;;  %820 = vst [vmem:[%s1659_s17 + $0x90] sm:$0xff] %v761_v37  ;;  %v763_v40 = vpop.f32.mrb[9].mxu1  ;;  %v907_v41 = vmul.f32 %v731_v36, %v731_v36  ;;  %v917_v42 = vmul.f32 %v761_v37, %v761_v37 }
 0x200   : > { %950 = vadd.xlane.f32.xlu1 %v949_v14  ;;  %811 = vst [vmem:[%s1659_s17 + $0x48] sm:$0xff] %v733_v39  ;;  %v908_v43 = vmul.f32 %v733_v39, %v733_v39  ;;  %v846_v44 = vadd.f32 %v733_v39, %v731_v36  ;;  %821 = vst [vmem:[%s1659_s17 + $0x98] sm:$0xff] %v763_v40  ;;  %v861_v45 = vadd.f32 %v763_v40, %v761_v37 }
 0x201   : > { %v918_v46 = vmul.f32 %v763_v40, %v763_v40 }
 0x202   : > { %841 = vadd.xlane.f32.xlu0 %v840_v19  ;;  %v767_v47 = vpop.f32.mrb[10].mxu1  ;;  %v943_v48 = vadd.f32 %v908_v43, %v907_v41 }
 0x203   : > { %v958_v49 = vadd.f32 %v918_v46, %v917_v42  ;;  %822 = vst [vmem:[%s1659_s17 + $0xa0] sm:$0xff] %v767_v47  ;;  %v769_v50 = vpop.f32.mrb[11].mxu1  ;;  %v919_v51 = vmul.f32 %v767_v47, %v767_v47 }
 0x204   : > { %938 = vadd.xlane.f32.xlu1 %v937_v24  ;;  %823 = vst [vmem:[%s1659_s17 + $0xa8] sm:$0xff] %v769_v50  ;;  %v864_v52 = vadd.f32 %v769_v50, %v767_v47  ;;  %v920_v53 = vmul.f32 %v769_v50, %v769_v50 }
 0x206   : > { %856 = vadd.xlane.f32.xlu0 %v855_v21  ;;  %v773_v54 = vpop.f32.mrb[12].mxu1  ;;  %v961_v55 = vadd.f32 %v920_v53, %v919_v51 }
 0x207   : > { %824 = vst [vmem:[%s1659_s17 + $0xb0] sm:$0xff] %v773_v54  ;;  %v775_v0 = vpop.f32.mrb[13].mxu1  ;;  %v921_v56 = vmul.f32 %v773_v54, %v773_v54 }
 0x208   : > { %859 = vadd.xlane.f32.xlu1 %v858_v31  ;;  %825 = vst [vmem:[%s1659_s17 + $0xb8] sm:$0xff] %v775_v0  ;;  %v867_v57 = vadd.f32 %v775_v0, %v773_v54  ;;  %v922_v58 = vmul.f32 %v775_v0, %v775_v0 }
 0x20a   : > { %953 = vadd.xlane.f32.xlu0 %v952_v25  ;;  %v779_v59 = vpop.f32.mrb[14].mxu1  ;;  %v964_v60 = vadd.f32 %v922_v58, %v921_v56 }
 0x20b   : > { %826 = vst [vmem:[%s1659_s17 + $0xc0] sm:$0xff] %v779_v59  ;;  %v781_v61 = vpop.f32.mrb[15].mxu1  ;;  %v923_v62 = vmul.f32 %v779_v59, %v779_v59 }
 0x20c   : > { %956 = vadd.xlane.f32.xlu1 %v955_v35  ;;  %827 = vst [vmem:[%s1659_s17 + $0xc8] sm:$0xff] %v781_v61  ;;  %v870_v63 = vadd.f32 %v781_v61, %v779_v59  ;;  %v924_v1 = vmul.f32 %v781_v61, %v781_v61 }
 0x20e   : > { %844 = vadd.xlane.f32.xlu0 %v843_v33  ;;  %v785_v2 = vpop.f32.mrb[16].mxu1  ;;  %v967_v3 = vadd.f32 %v924_v1, %v923_v62 }
 0x20f   : > { %828 = vst [vmem:[%s1659_s17 + $0xd0] sm:$0xff] %v785_v2  ;;  %v787_v4 = vpop.f32.mrb[17].mxu1  ;;  %v925_v5 = vmul.f32 %v785_v2, %v785_v2 }
 0x210   : > { %847 = vadd.xlane.f32.xlu1 %v846_v44  ;;  %829 = vst [vmem:[%s1659_s17 + $0xd8] sm:$0xff] %v787_v4  ;;  %v873_v6 = vadd.f32 %v787_v4, %v785_v2  ;;  %v926_v7 = vmul.f32 %v787_v4, %v787_v4 }
 0x212   : > { %941 = vadd.xlane.f32.xlu0 %v940_v38  ;;  %v791_v8 = vpop.f32.mrb[18].mxu1  ;;  %v970_v9 = vadd.f32 %v926_v7, %v925_v5 }
 0x213   : > { %830 = vst [vmem:[%s1659_s17 + $0xe0] sm:$0xff] %v791_v8  ;;  %v793_v10 = vpop.f32.mrb[19].mxu1  ;;  %v927_v11 = vmul.f32 %v791_v8, %v791_v8 }
 0x214   : > { %944 = vadd.xlane.f32.xlu1 %v943_v48  ;;  %831 = vst [vmem:[%s1659_s17 + $0xe8] sm:$0xff] %v793_v10  ;;  %v876_v12 = vadd.f32 %v793_v10, %v791_v8  ;;  %v928_v13 = vmul.f32 %v793_v10, %v793_v10 }
 0x216   : > { %862 = vadd.xlane.f32.xlu0 %v861_v45  ;;  %v797_v14 = vpop.f32.mrb[20].mxu1  ;;  %v973_v15 = vadd.f32 %v928_v13, %v927_v11 }
 0x217   : > { %832 = vst [vmem:[%s1659_s17 + $0xf0] sm:$0xff] %v797_v14  ;;  %v799_v16 = vpop.f32.mrb[21].mxu1  ;;  %v929_v17 = vmul.f32 %v797_v14, %v797_v14 }
 0x218   : > { %865 = vadd.xlane.f32.xlu1 %v864_v52  ;;  %833 = vst [vmem:[%s1659_s17 + $0xf8] sm:$0xff] %v799_v16  ;;  %v930_v18 = vmul.f32 %v799_v16, %v799_v16  ;;  %v879_v19 = vadd.f32 %v799_v16, %v797_v14 }
 0x21a   : > { %959 = vadd.xlane.f32.xlu0 %v958_v49  ;;  %v976_v20 = vadd.f32 %v930_v18, %v929_v17 }
 0x21c   : > { %962 = vadd.xlane.f32.xlu1 %v961_v55 }
 0x21e   : > { %868 = vadd.xlane.f32.xlu0 %v867_v57 }
 0x220   : > { %871 = vadd.xlane.f32.xlu1 %v870_v63 }
 0x222   : > { %965 = vadd.xlane.f32.xlu0 %v964_v60 }
 0x224   : > { %968 = vadd.xlane.f32.xlu1 %v967_v3 }
 0x226   : > { %874 = vadd.xlane.f32.xlu0 %v873_v6 }
 0x228   : > { %877 = vadd.xlane.f32.xlu1 %v876_v12 }
 0x22a   : > { %971 = vadd.xlane.f32.xlu0 %v970_v9 }
 0x22c   : > { %974 = vadd.xlane.f32.xlu1 %v973_v15 }
 0x22e   : > { %880 = vadd.xlane.f32.xlu0 %v879_v19 }
 0x232   : > { %977 = vadd.xlane.f32.xlu0 %v976_v20 }
 0x233   : > { %1342 = shalt.err (!%p1339_p5)
}
 0x234   : > { %s1343_s14 = scalar_lea.hbm %s1698_s28, 4096  ;;  %s1347_s17 = scalar_lea.hbm %s1829_s4, 8192 }
 0x235   : > { %p1344_p6 = scmp.ne.s32.totalorder %s1698_s28, %s1343_s14  ;;  %p1348_p10 = scmp.lt.u32.totalorder %s1698_s28, %s1829_s4 }
 0x236   : > { %p1349_p11 = scmp.lt.u32.totalorder %s1347_s17, %s1343_s14  ;;  %p1351_p13 = scmp.lt.u32.totalorder %s1343_s14, %s1698_s28 }
 0x237   : > { %p1345_p7 = pnand %p1344_p6, %p1489_p4 }
 0x238   : > { %p1350_p12 = por %p1349_p11, %p1348_p10 }
 0x239   : > { %p1346_p9 = pneg %p1345_p7 }
 0x23a   : > { %p1352_p0 = por %p1351_p13, %p1350_p12 }
 0x23c   : > { %p1353_p1 = pnand %p1352_p0, %p1346_p9 }
 0x23e   : > { %1356 = shalt.err (!%p1353_p1)
}
 0x23f   : > { %s1412_s27 = smov 256   ;;  %s1413_s8 = smov 16   ;;  %vm882_vm3 = vcmask 7168  }
 0x240   : > { %1267 = dma.vmem_to_hbm [thread:$0]  (%p1489_p4), %s1700_s19, 4096, %s1698_s28, %s1704_s30, %s1412_s27, %s1412_s27, %s1413_s8  }
 0x241   : > { %s1240_s24 = sshll.u32 %s1508_s11, 7 }
 0x242   : > { %s1732_s15 = scalar_lea.vmem %s1830_s5, %s1240_s24  ;;  %s1737_s17 = scalar_lea.vmem %s1831_s6, %s1240_s24 }
 0x27f   : > { %v836_v21 = vpop.xlane.xlu0 %835 }
 0x280   : > { %883 = vst.msk [vmem:[%s1732_s15] sm:$0xff] %vm882_vm3, %v836_v21 }
 0x281   : > { %v933_v22 = vpop.xlane.xlu1 %932 }
 0x282   : > { %979 = vst.msk [vmem:[%s1737_s17] sm:$0xff] %vm882_vm3, %v933_v22 }
 0x283   : > { %v851_v23 = vpop.xlane.xlu0 %850 }
 0x284   : > { %888 = vst.msk [vmem:[%s1732_s15 + $0x28] sm:$0xff] %vm882_vm3, %v851_v23 }
 0x285   : > { %v839_v24 = vpop.xlane.xlu1 %838 }
 0x286   : > { %884 = vst.msk [vmem:[%s1732_s15 + $0x8] sm:$0xff] %vm882_vm3, %v839_v24 }
 0x287   : > { %v948_v25 = vpop.xlane.xlu0 %947 }
 0x288   : > { %984 = vst.msk [vmem:[%s1737_s17 + $0x28] sm:$0xff] %vm882_vm3, %v948_v25 }
 0x289   : > { %v854_v26 = vpop.xlane.xlu1 %853 }
 0x28a   : > { %889 = vst.msk [vmem:[%s1732_s15 + $0x30] sm:$0xff] %vm882_vm3, %v854_v26 }
 0x28b   : > { %v936_v27 = vpop.xlane.xlu0 %935 }
 0x28c   : > { %980 = vst.msk [vmem:[%s1737_s17 + $0x8] sm:$0xff] %vm882_vm3, %v936_v27 }
 0x28d   : > { %v951_v28 = vpop.xlane.xlu1 %950 }
 0x28e   : > { %985 = vst.msk [vmem:[%s1737_s17 + $0x30] sm:$0xff] %vm882_vm3, %v951_v28 }
 0x28f   : > { %v842_v29 = vpop.xlane.xlu0 %841 }
 0x290   : > { %885 = vst.msk [vmem:[%s1732_s15 + $0x10] sm:$0xff] %vm882_vm3, %v842_v29 }
 0x291   : > { %v939_v30 = vpop.xlane.xlu1 %938 }
 0x292   : > { %981 = vst.msk [vmem:[%s1737_s17 + $0x10] sm:$0xff] %vm882_vm3, %v939_v30 }
 0x293   : > { %v857_v31 = vpop.xlane.xlu0 %856 }
 0x294   : > { %890 = vst.msk [vmem:[%s1732_s15 + $0x38] sm:$0xff] %vm882_vm3, %v857_v31 }
 0x295   : > { %v860_v32 = vpop.xlane.xlu1 %859 }
 0x296   : > { %891 = vst.msk [vmem:[%s1732_s15 + $0x40] sm:$0xff] %vm882_vm3, %v860_v32 }
 0x297   : > { %v954_v33 = vpop.xlane.xlu0 %953 }
 0x298   : > { %986 = vst.msk [vmem:[%s1737_s17 + $0x38] sm:$0xff] %vm882_vm3, %v954_v33 }
 0x299   : > { %v957_v34 = vpop.xlane.xlu1 %956 }
 0x29a   : > { %987 = vst.msk [vmem:[%s1737_s17 + $0x40] sm:$0xff] %vm882_vm3, %v957_v34 }
 0x29b   : > { %v845_v35 = vpop.xlane.xlu0 %844 }
 0x29c   : > { %886 = vst.msk [vmem:[%s1732_s15 + $0x18] sm:$0xff] %vm882_vm3, %v845_v35 }
 0x29d   : > { %v848_v36 = vpop.xlane.xlu1 %847 }
 0x29e   : > { %887 = vst.msk [vmem:[%s1732_s15 + $0x20] sm:$0xff] %vm882_vm3, %v848_v36 }
 0x29f   : > { %v942_v37 = vpop.xlane.xlu0 %941 }
 0x2a0   : > { %982 = vst.msk [vmem:[%s1737_s17 + $0x18] sm:$0xff] %vm882_vm3, %v942_v37 }
 0x2a1   : > { %v945_v38 = vpop.xlane.xlu1 %944 }
 0x2a2   : > { %983 = vst.msk [vmem:[%s1737_s17 + $0x20] sm:$0xff] %vm882_vm3, %v945_v38 }
 0x2a3   : > { %v863_v39 = vpop.xlane.xlu0 %862 }
 0x2a4   : > { %892 = vst.msk [vmem:[%s1732_s15 + $0x48] sm:$0xff] %vm882_vm3, %v863_v39 }
 0x2a5   : > { %v866_v40 = vpop.xlane.xlu1 %865 }
 0x2a6   : > { %893 = vst.msk [vmem:[%s1732_s15 + $0x50] sm:$0xff] %vm882_vm3, %v866_v40 }
 0x2a7   : > { %v960_v41 = vpop.xlane.xlu0 %959 }
 0x2a8   : > { %988 = vst.msk [vmem:[%s1737_s17 + $0x48] sm:$0xff] %vm882_vm3, %v960_v41 }
 0x2a9   : > { %v963_v42 = vpop.xlane.xlu1 %962 }
 0x2aa   : > { %989 = vst.msk [vmem:[%s1737_s17 + $0x50] sm:$0xff] %vm882_vm3, %v963_v42 }
 0x2ab   : > { %v869_v43 = vpop.xlane.xlu0 %868 }
 0x2ac   : > { %894 = vst.msk [vmem:[%s1732_s15 + $0x58] sm:$0xff] %vm882_vm3, %v869_v43 }
 0x2ad   : > { %v872_v44 = vpop.xlane.xlu1 %871 }
 0x2ae   : > { %895 = vst.msk [vmem:[%s1732_s15 + $0x60] sm:$0xff] %vm882_vm3, %v872_v44 }
 0x2af   : > { %v966_v45 = vpop.xlane.xlu0 %965 }
 0x2b0   : > { %990 = vst.msk [vmem:[%s1737_s17 + $0x58] sm:$0xff] %vm882_vm3, %v966_v45 }
 0x2b1   : > { %v969_v46 = vpop.xlane.xlu1 %968 }
 0x2b2   : > { %991 = vst.msk [vmem:[%s1737_s17 + $0x60] sm:$0xff] %vm882_vm3, %v969_v46 }
 0x2b3   : > { %v875_v47 = vpop.xlane.xlu0 %874 }
 0x2b4   : > { %896 = vst.msk [vmem:[%s1732_s15 + $0x68] sm:$0xff] %vm882_vm3, %v875_v47 }
 0x2b5   : > { %v878_v48 = vpop.xlane.xlu1 %877 }
 0x2b6   : > { %897 = vst.msk [vmem:[%s1732_s15 + $0x70] sm:$0xff] %vm882_vm3, %v878_v48 }
 0x2b7   : > { %v972_v49 = vpop.xlane.xlu0 %971 }
 0x2b8   : > { %992 = vst.msk [vmem:[%s1737_s17 + $0x68] sm:$0xff] %vm882_vm3, %v972_v49 }
 0x2b9   : > { %v975_v50 = vpop.xlane.xlu1 %974 }
 0x2ba   : > { %993 = vst.msk [vmem:[%s1737_s17 + $0x70] sm:$0xff] %vm882_vm3, %v975_v50 }
 0x2bb   : > { %v881_v51 = vpop.xlane.xlu0 %880 }
 0x2bc   : > { %898 = vst.msk [vmem:[%s1732_s15 + $0x78] sm:$0xff] %vm882_vm3, %v881_v51 }
 0x2bf   : > { %v978_v52 = vpop.xlane.xlu0 %977 }
 0x2c0   : > { %994 = vst.msk [vmem:[%s1737_s17 + $0x78] sm:$0xff] %vm882_vm3, %v978_v52 }
 0x2c1 PF: > { %p1273_p4 = scmp.ge.s32.totalorder %s1407_s26, 2  ;;  %s1050_s7 = sand.u32 1, %s1387_s21  }
 0x2c2   : > { %s1051_s11 = scalar_lea.sflag [#allocation3], %s1050_s7 }
 0x2c3   : > { %p1270_p2 = pnand %p1273_p4, %p1496_p8 }
 0x2c5   : > { %1382 = dma.done.wait (!%p1270_p2), %s1051_s11, 4096  }
 0x2c6   : > { %1384 = vsyncadd (!%p1270_p2), %s1051_s11, 4294963200  ;;  %s20_s26 = sadd.s32 1, %s1407_s26   ;;  %s1834_s21 = smov %s1391_s22 }
 0x2c7   : > { %p17_p3 = scmp.ge.s32.totalorder %s20_s26, 4   ;;  %s1835_s22 = smov %s1395_s23 }
 0x2c8   : > { %s1836_s23 = smov %s1502_s10  ;;  %s1837_s24 = smov %s1403_s25 }
 0x2c9   : > { %s1838_s25 = smov %s1840_s29  ;;  %19 = sbr.rel (!%p17_p3) target bundleno = 4 (0x4), region = 95 }
 0x2d0   :  { %1080 = vsyncpa [#allocation3], 1 }
 0x2d1   :  { %1082 = vsyncpa [#allocation3 + $0x1], 1 }

</bundles_post_ra>
